<compile_context>
chip_gen: v5e
topology: v5e:2x2
jax: 0.10.0
libtpu: 0.0.40
codegen_flags: <defaults>
</compile_context>

<pallas_src>
import functools

import jax
import jax.numpy as jnp
from jax.experimental import pallas as pl
from jax.experimental.pallas import tpu as pltpu


def _full_spec(shape):
    """Whole-array block (block dims equal full array dims -> always legal)."""
    n = len(shape)
    return pl.BlockSpec(shape, lambda *_: (0,) * n)


# ----------------------------------------------------------------------------
# Fused kernel (encoder + GRU + head)
# ----------------------------------------------------------------------------
def _make_fused_kernel(H, W, Cin, T, F, L, Hh):
    """All sizes are static Python ints captured by closure."""
    f32 = jnp.float32
    bf16 = jnp.bfloat16

    def kernel(imgp_ref, wcat_ref, bconv_ref, wenc_ref,
               seq_ref, wih_ref, whh_ref, bi_ref, bhn_ref,
               wrnn_ref, bfin_ref, out_ref):
        # ---------------- CNN encoder (resnet50 stand-in) ----------------
        # 3x3 "same" conv as ONE MXU call: the 9 shifted slabs of the padded
        # image are lane-concatenated to K = 9*W*Cin and hit a single
        # (9*W*Cin, W*C) block-diagonal weight.  Slicing is done in f32
        # (cheap, robust); the MXU inputs are bf16.
        imgp = imgp_ref[...].astype(f32)                       # (B, H+2, (W+2)*Cin)
        slabs = []
        for o in range(9):
            ky, kx = divmod(o, 3)
            slabs.append(imgp[:, ky:ky + H, kx * Cin:kx * Cin + W * Cin])
        slab = jnp.concatenate(slabs, axis=-1).astype(bf16)    # (B, H, 9*W*Cin)
        conv = jax.lax.dot_general(
            slab, wcat_ref[...],
            dimension_numbers=(((2,), (0,)), ((), ())),
            preferred_element_type=f32)                        # (B, H, W*C) f32
        conv = jnp.maximum(conv + bconv_ref[...], 0.0)         # bias + ReLU (f32)
        # GAP + enc fc + final_layer(top) folded into wenc (1/(H*W) included);
        # only the sum over the H sublane axis stays outside the MXU.
        pooled = jnp.sum(conv, axis=1)                         # (B, W*C) f32
        enc_contrib = jnp.dot(pooled.astype(bf16), wenc_ref[...],
                              preferred_element_type=f32)      # (B, cls_pad)

        # ---------------- GRU(max_len, embedding_dim) --------------------
        # Input projection for ALL gates and ALL steps in one matmul; the
        # bias already contains b_ih + b_hh for the r/z gates (folded).
        gi_all = jax.lax.dot_general(
            seq_ref[...], wih_ref[...],
            dimension_numbers=(((2,), (0,)), ((), ())),
            preferred_element_type=f32) + bi_ref[...]          # (T, F, gate_pad)

        h = jnp.zeros((F, Hh), f32)                            # h0 = zeros
        rows = []
        for t in range(T):                                     # fully unrolled (T static)
            # ONE packed hh matmul per serial step (was 3).
            gh = jnp.dot(h.astype(bf16), whh_ref[...],
                         preferred_element_type=f32)           # (F, gate_pad)
            gi = gi_all[t]                                     # (F, gate_pad)
            r = jax.nn.sigmoid(gi[:, 0:Hh] + gh[:, 0:Hh])
            z = jax.nn.sigmoid(gi[:, Hh:2 * Hh] + gh[:, Hh:2 * Hh])
            n = jnp.tanh(gi[:, 2 * Hh:3 * Hh]
                         + r * (gh[:, 2 * Hh:3 * Hh] + bhn_ref[...]))  # PyTorch n-gate
            h = (1.0 - z) * n + z * h
            # hidden.view(T, F*Hh) row for this step: lane-concat the F rows.
            rows.append(jnp.concatenate([h[f:f + 1, :] for f in range(F)], axis=1))
        h_cat = jnp.concatenate(rows, axis=0)                  # (T, F*Hh) f32

        # ---------------- head: rnn_fc + final_layer (folded) ------------
        # One K = F*Hh (=128) matmul instead of F sub-tile matmuls.
        rnn_contrib = jnp.dot(h_cat.astype(bf16), wrnn_ref[...],
                              preferred_element_type=f32)      # (T, cls_pad)

        # Dropout(rate) is identity in eval mode.
        out_ref[...] = enc_contrib + rnn_contrib + bfin_ref[...]   # lane-dense store

    return kernel


# ----------------------------------------------------------------------------
# Parameters (PyTorch layouts)
# ----------------------------------------------------------------------------
def init_params(key, max_len, embedding_dim, num_features, class_n, conv_ch=8):
    ks = jax.random.split(key, 12)
    s = 0.05
    n = lambda k, shape: (s * jax.random.normal(k, shape)).astype(jnp.float32)
    return dict(
        # CNN encoder stand-in (see TODO(synk) above)
        conv_w=n(ks[0], (conv_ch, 3, 3, 3)),
        conv_b=n(ks[1], (conv_ch,)),
        enc_fc_w=n(ks[2], (1000, conv_ch)),
        enc_fc_b=n(ks[3], (1000,)),
        # GRU(max_len, embedding_dim) — PyTorch parameter shapes (r, z, n order)
        gru_w_ih=n(ks[4], (3 * embedding_dim, max_len)),
        gru_w_hh=n(ks[5], (3 * embedding_dim, embedding_dim)),
        gru_b_ih=n(ks[6], (3 * embedding_dim,)),
        gru_b_hh=n(ks[7], (3 * embedding_dim,)),
        # rnn_fc: Linear(num_features*embedding_dim, 1000)
        rnn_fc_w=n(ks[8], (1000, num_features * embedding_dim)),
        rnn_fc_b=n(ks[9], (1000,)),
        # final_layer: Linear(2000, class_n)
        final_w=n(ks[10], (class_n, 2000)),
        final_b=n(ks[11], (class_n,)),
    )


# ----------------------------------------------------------------------------
# One-time weight folding (hoisted off the per-call path)
# ----------------------------------------------------------------------------
def fold_params(params, img_shape, seq_shape):
    f32, bf16 = jnp.float32, jnp.bfloat16
    B, Cin, H, W = img_shape
    T, F, L = seq_shape
    C = params["conv_w"].shape[0]
    Hh = params["gru_w_hh"].shape[1]
    class_n = params["final_w"].shape[0]
    cls_pad = ((class_n + 127) // 128) * 128
    gpad = ((3 * Hh + 127) // 128) * 128            # packed-gate lane width

    # 3x3 conv -> one block-diagonal matrix per offset, concatenated along K.
    eye_w = jnp.eye(W, dtype=f32)
    wcat = jnp.concatenate(
        [jnp.kron(eye_w, params["conv_w"][:, :, ky, kx].T)
         for ky in range(3) for kx in range(3)], axis=0)          # (9*W*Cin, W*C)
    bconv = jnp.tile(params["conv_b"], (W,)).reshape(1, 1, W * C)

    # Fold GAP + enc_fc + final_layer(top) and rnn_fc + final_layer(bottom);
    # pad the class dim to 128 lanes.
    wtop = jnp.pad(params["final_w"][:, :1000].T, ((0, 0), (0, cls_pad - class_n)))
    wbot = jnp.pad(params["final_w"][:, 1000:].T, ((0, 0), (0, cls_pad - class_n)))
    wenc = jnp.tile((params["enc_fc_w"].T @ wtop) / float(H * W), (W, 1))  # (W*C, cls_pad)
    wrnn = params["rnn_fc_w"].T @ wbot                                     # (F*Hh, cls_pad)
    bfin = (jnp.pad(params["final_b"], (0, cls_pad - class_n))
            + params["enc_fc_b"] @ wtop
            + params["rnn_fc_b"] @ wbot).reshape(1, cls_pad)

    # GRU weights packed gate-major on the lane axis [r | z | n] (zero-padded);
    # b_hh_r / b_hh_z are folded into the input-side bias (they always appear
    # summed); only b_hh_n stays separate because of the r* factor.
    w_ih, w_hh = params["gru_w_ih"], params["gru_w_hh"]
    b_ih, b_hh = params["gru_b_ih"], params["gru_b_hh"]
    wih = jnp.pad(w_ih.T, ((0, 0), (0, gpad - 3 * Hh)))            # (L,  gpad)
    whh = jnp.pad(w_hh.T, ((0, 0), (0, gpad - 3 * Hh)))            # (Hh, gpad)
    bi = jnp.concatenate([b_ih[:Hh] + b_hh[:Hh],
                          b_ih[Hh:2 * Hh] + b_hh[Hh:2 * Hh],
                          b_ih[2 * Hh:]], axis=0)
    bi = jnp.pad(bi, (0, gpad - 3 * Hh)).reshape(1, 1, gpad)
    bhn = b_hh[2 * Hh:].reshape(1, Hh)

    return dict(
        wcat=wcat.astype(bf16), bconv=bconv.astype(f32), wenc=wenc.astype(bf16),
        wih=wih.astype(bf16), whh=whh.astype(bf16),
        bi=bi.astype(f32), bhn=bhn.astype(f32),
        wrnn=wrnn.astype(bf16), bfin=bfin.astype(f32),
    )


# ----------------------------------------------------------------------------
# Forward (per-call path: cheap input prep + one fused pallas_call)
# ----------------------------------------------------------------------------
@functools.partial(jax.jit, static_argnames=("class_n",))
def cnn2rnn_forward(folded, img, seq, *, class_n):
    f32, bf16 = jnp.float32, jnp.bfloat16
    B, Cin, H, W = img.shape
    T, F, L = seq.shape
    assert T == B, "GRU 'time' axis is the batch axis (batch_first=False quirk)"
    WC = folded["wenc"].shape[0]
    Hh = folded["whh"].shape[0]
    cls_pad = folded["wenc"].shape[1]

    # Padded NHWC image with W and Cin merged on the lane axis (bf16 for HBM/MXU).
    img_nhwc = jnp.transpose(img.astype(bf16), (0, 2, 3, 1))       # (B,H,W,Cin)
    imgp = jnp.pad(img_nhwc, ((0, 0), (1, 1), (1, 1), (0, 0)))
    imgp = imgp.reshape(B, H + 2, (W + 2) * Cin)
    seq_b = seq.astype(bf16)

    operands = (imgp, folded["wcat"], folded["bconv"], folded["wenc"],
                seq_b, folded["wih"], folded["whh"], folded["bi"], folded["bhn"],
                folded["wrnn"], folded["bfin"])

    flops = (2 * B * H * (9 * W * Cin) * WC            # conv (single K=9*W*Cin matmul)
             + 2 * B * WC * cls_pad                    # enc head
             + 2 * T * F * L * folded["wih"].shape[1]  # GRU input projection (all steps)
             + 2 * T * F * Hh * folded["whh"].shape[1] # GRU hh (one per step)
             + 2 * T * (F * Hh) * cls_pad)             # rnn head
    bytes_accessed = int(sum(a.size * a.dtype.itemsize for a in operands)
                         + B * cls_pad * 4)
    cost = pl.CostEstimate(flops=flops, transcendentals=3 * T * F * Hh,
                           bytes_accessed=bytes_accessed)

    kernel = _make_fused_kernel(H, W, Cin, T, F, L, Hh)
    # Whole-array blocks: total operand footprint is <0.5 MiB at these sizes,
    # far under VMEM on v5e/v6e/v7x.  If H/W ever grow, tile the conv over H
    # with a BlockSpec grid and set vmem_limit_bytes explicitly.
    out_pad = pl.pallas_call(
        kernel,
        grid=(1,),
        in_specs=[_full_spec(a.shape) for a in operands],
        out_specs=_full_spec((B, cls_pad)),
        out_shape=jax.ShapeDtypeStruct((B, cls_pad), f32),
        compiler_params=pltpu.CompilerParams(dimension_semantics=("arbitrary",)),
        cost_estimate=cost,
    )(*operands)
    return out_pad[:, :class_n]


if __name__ == "__main__":
    # Module hyper-params (small, consistent with the forward pass):
    max_len, embedding_dim, num_features, class_n, rate = 8, 32, 4, 10, 0.1
    B, Cin, Himg, Wimg = 2, 3, 16, 16

    key = jax.random.PRNGKey(0)
    k_img, k_seq, k_par = jax.random.split(key, 3)

    img = jax.random.normal(k_img, (B, Cin, Himg, Wimg), dtype=jnp.float32)
    seq = jax.random.normal(k_seq, (B, num_features, max_len), dtype=jnp.float32)

    params = init_params(k_par, max_len, embedding_dim, num_features, class_n)
    # One-time folding (off the per-call path).
    folded = fold_params(params, img.shape, seq.shape)
    jax.block_until_ready(folded)

    out = cnn2rnn_forward(folded, img, seq, class_n=class_n)
    jax.block_until_ready(out)
    assert out.shape == (B, class_n), out.shape
    print("KERNEL_OK")
</pallas_src>

<mosaic_0001>
module attributes {stable_mosaic.version = 11 : i64} {
  func.func @kernel(%arg0: i32, %arg1: memref<2x18x54xbf16, #tpu.memory_space<vmem>>, %arg2: memref<432x128xbf16, #tpu.memory_space<vmem>>, %arg3: memref<1x1x128xf32, #tpu.memory_space<vmem>>, %arg4: memref<128x128xbf16, #tpu.memory_space<vmem>>, %arg5: memref<2x4x8xbf16, #tpu.memory_space<vmem>>, %arg6: memref<8x128xbf16, #tpu.memory_space<vmem>>, %arg7: memref<32x128xbf16, #tpu.memory_space<vmem>>, %arg8: memref<1x1x128xf32, #tpu.memory_space<vmem>>, %arg9: memref<1x32xf32, #tpu.memory_space<vmem>>, %arg10: memref<128x128xbf16, #tpu.memory_space<vmem>>, %arg11: memref<1x128xf32, #tpu.memory_space<vmem>>, %arg12: memref<2x128xf32, #tpu.memory_space<vmem>>) attributes {dimension_semantics = [#tpu.dimension_semantics<arbitrary>], iteration_bounds = array<i64: 1>, scalar_prefetch = 0 : i64, scratch_operands = 0 : i64, tpu.core_type = #tpu.core_type<tc>, window_params = [{pipeline_mode = #tpu.pipeline_mode<synchronous>, transform_indices = @transform_0, window_bounds = array<i64: 2, 18, 54>}, {pipeline_mode = #tpu.pipeline_mode<synchronous>, transform_indices = @transform_1, window_bounds = array<i64: 432, 128>}, {pipeline_mode = #tpu.pipeline_mode<synchronous>, transform_indices = @transform_2, window_bounds = array<i64: 1, 1, 128>}, {pipeline_mode = #tpu.pipeline_mode<synchronous>, transform_indices = @transform_3, window_bounds = array<i64: 128, 128>}, {pipeline_mode = #tpu.pipeline_mode<synchronous>, transform_indices = @transform_4, window_bounds = array<i64: 2, 4, 8>}, {pipeline_mode = #tpu.pipeline_mode<synchronous>, transform_indices = @transform_5, window_bounds = array<i64: 8, 128>}, {pipeline_mode = #tpu.pipeline_mode<synchronous>, transform_indices = @transform_6, window_bounds = array<i64: 32, 128>}, {pipeline_mode = #tpu.pipeline_mode<synchronous>, transform_indices = @transform_7, window_bounds = array<i64: 1, 1, 128>}, {pipeline_mode = #tpu.pipeline_mode<synchronous>, transform_indices = @transform_8, window_bounds = array<i64: 1, 32>}, {pipeline_mode = #tpu.pipeline_mode<synchronous>, transform_indices = @transform_9, window_bounds = array<i64: 128, 128>}, {pipeline_mode = #tpu.pipeline_mode<synchronous>, transform_indices = @transform_10, window_bounds = array<i64: 1, 128>}, {pipeline_mode = #tpu.pipeline_mode<synchronous>, transform_indices = @transform_11, window_bounds = array<i64: 2, 128>}]} {
    %c0 = arith.constant 0 : index
    %c0_0 = arith.constant 0 : index
    %c0_1 = arith.constant 0 : index
    %0 = vector.load %arg1[%c0, %c0_0, %c0_1] : memref<2x18x54xbf16, #tpu.memory_space<vmem>>, vector<2x18x54xbf16>
    %1 = arith.extf %0 : vector<2x18x54xbf16> to vector<2x18x54xf32>
    %2 = vector.extract_strided_slice %1 {offsets = [0, 0, 0], sizes = [2, 16, 48], strides = [1, 1, 1]} : vector<2x18x54xf32> to vector<2x16x48xf32>
    %3 = vector.extract_strided_slice %1 {offsets = [0, 0, 3], sizes = [2, 16, 48], strides = [1, 1, 1]} : vector<2x18x54xf32> to vector<2x16x48xf32>
    %4 = vector.extract_strided_slice %1 {offsets = [0, 0, 6], sizes = [2, 16, 48], strides = [1, 1, 1]} : vector<2x18x54xf32> to vector<2x16x48xf32>
    %5 = vector.extract_strided_slice %1 {offsets = [0, 1, 0], sizes = [2, 16, 48], strides = [1, 1, 1]} : vector<2x18x54xf32> to vector<2x16x48xf32>
    %6 = vector.extract_strided_slice %1 {offsets = [0, 1, 3], sizes = [2, 16, 48], strides = [1, 1, 1]} : vector<2x18x54xf32> to vector<2x16x48xf32>
    %7 = vector.extract_strided_slice %1 {offsets = [0, 1, 6], sizes = [2, 16, 48], strides = [1, 1, 1]} : vector<2x18x54xf32> to vector<2x16x48xf32>
    %8 = vector.extract_strided_slice %1 {offsets = [0, 2, 0], sizes = [2, 16, 48], strides = [1, 1, 1]} : vector<2x18x54xf32> to vector<2x16x48xf32>
    %9 = vector.extract_strided_slice %1 {offsets = [0, 2, 3], sizes = [2, 16, 48], strides = [1, 1, 1]} : vector<2x18x54xf32> to vector<2x16x48xf32>
    %10 = vector.extract_strided_slice %1 {offsets = [0, 2, 6], sizes = [2, 16, 48], strides = [1, 1, 1]} : vector<2x18x54xf32> to vector<2x16x48xf32>
    %11 = tpu.concatenate %2, %3, %4, %5, %6, %7, %8, %9, %10 in 2 : vector<2x16x48xf32>, vector<2x16x48xf32>, vector<2x16x48xf32>, vector<2x16x48xf32>, vector<2x16x48xf32>, vector<2x16x48xf32>, vector<2x16x48xf32>, vector<2x16x48xf32>, vector<2x16x48xf32> -> vector<2x16x432xf32>
    %12 = arith.truncf %11 : vector<2x16x432xf32> to vector<2x16x432xbf16>
    %c0_2 = arith.constant 0 : index
    %c0_3 = arith.constant 0 : index
    %13 = vector.load %arg2[%c0_2, %c0_3] : memref<432x128xbf16, #tpu.memory_space<vmem>>, vector<432x128xbf16>
    %cst = arith.constant dense<0.000000e+00> : vector<2x16x128xf32>
    %14 = tpu.matmul %12, %13, %cst {dimension_numbers = #tpu.dot_dimension_numbers<[2], [0], [0, 1], [1], [0, 0, 0, 1, 1, 1], [], []>} : vector<2x16x432xbf16>, vector<432x128xbf16>, vector<2x16x128xf32> -> vector<2x16x128xf32>
    %c0_4 = arith.constant 0 : index
    %c0_5 = arith.constant 0 : index
    %c0_6 = arith.constant 0 : index
    %15 = vector.load %arg3[%c0_4, %c0_5, %c0_6] : memref<1x1x128xf32, #tpu.memory_space<vmem>>, vector<1x1x128xf32>
    %16 = vector.broadcast %15 : vector<1x1x128xf32> to vector<2x16x128xf32>
    %17 = arith.addf %14, %16 : vector<2x16x128xf32>
    %cst_7 = arith.constant 0.000000e+00 : f32
    %18 = vector.broadcast %cst_7 : f32 to vector<2x16x128xf32>
    %19 = arith.maximumf %17, %18 : vector<2x16x128xf32>
    %cst_8 = arith.constant dense<0.000000e+00> : vector<2x128xf32>
    %20 = vector.multi_reduction <add>, %19, %cst_8 [1] : vector<2x16x128xf32> to vector<2x128xf32>
    %21 = arith.truncf %20 : vector<2x128xf32> to vector<2x128xbf16>
    %c0_9 = arith.constant 0 : index
    %c0_10 = arith.constant 0 : index
    %22 = vector.load %arg4[%c0_9, %c0_10] : memref<128x128xbf16, #tpu.memory_space<vmem>>, vector<128x128xbf16>
    %cst_11 = arith.constant dense<0.000000e+00> : vector<2x128xf32>
    %23 = tpu.matmul %21, %22, %cst_11 {dimension_numbers = #tpu.dot_dimension_numbers<[1], [0], [0], [1], [0, 0, 1, 1], [], []>} : vector<2x128xbf16>, vector<128x128xbf16>, vector<2x128xf32> -> vector<2x128xf32>
    %c0_12 = arith.constant 0 : index
    %c0_13 = arith.constant 0 : index
    %c0_14 = arith.constant 0 : index
    %24 = vector.load %arg5[%c0_12, %c0_13, %c0_14] : memref<2x4x8xbf16, #tpu.memory_space<vmem>>, vector<2x4x8xbf16>
    %c0_15 = arith.constant 0 : index
    %c0_16 = arith.constant 0 : index
    %25 = vector.load %arg6[%c0_15, %c0_16] : memref<8x128xbf16, #tpu.memory_space<vmem>>, vector<8x128xbf16>
    %cst_17 = arith.constant dense<0.000000e+00> : vector<2x4x128xf32>
    %26 = tpu.matmul %24, %25, %cst_17 {dimension_numbers = #tpu.dot_dimension_numbers<[2], [0], [0, 1], [1], [0, 0, 0, 1, 1, 1], [], []>} : vector<2x4x8xbf16>, vector<8x128xbf16>, vector<2x4x128xf32> -> vector<2x4x128xf32>
    %c0_18 = arith.constant 0 : index
    %c0_19 = arith.constant 0 : index
    %c0_20 = arith.constant 0 : index
    %27 = vector.load %arg8[%c0_18, %c0_19, %c0_20] : memref<1x1x128xf32, #tpu.memory_space<vmem>>, vector<1x1x128xf32>
    %28 = vector.broadcast %27 : vector<1x1x128xf32> to vector<2x4x128xf32>
    %29 = arith.addf %26, %28 : vector<2x4x128xf32>
    %cst_21 = arith.constant 0.000000e+00 : f32
    %30 = vector.broadcast %cst_21 : f32 to vector<4x32xf32>
    %31 = arith.truncf %30 : vector<4x32xf32> to vector<4x32xbf16>
    %c0_22 = arith.constant 0 : index
    %c0_23 = arith.constant 0 : index
    %32 = vector.load %arg7[%c0_22, %c0_23] : memref<32x128xbf16, #tpu.memory_space<vmem>>, vector<32x128xbf16>
    %cst_24 = arith.constant dense<0.000000e+00> : vector<4x128xf32>
    %33 = tpu.matmul %31, %32, %cst_24 {dimension_numbers = #tpu.dot_dimension_numbers<[1], [0], [0], [1], [0, 0, 1, 1], [], []>} : vector<4x32xbf16>, vector<32x128xbf16>, vector<4x128xf32> -> vector<4x128xf32>
    %34 = vector.extract_strided_slice %29 {offsets = [0, 0, 0], sizes = [1, 4, 128], strides = [1, 1, 1]} : vector<2x4x128xf32> to vector<1x4x128xf32>
    %35 = vector.shape_cast %34 : vector<1x4x128xf32> to vector<4x128xf32>
    %36 = vector.extract_strided_slice %35 {offsets = [0, 0], sizes = [4, 32], strides = [1, 1]} : vector<4x128xf32> to vector<4x32xf32>
    %37 = vector.extract_strided_slice %33 {offsets = [0, 0], sizes = [4, 32], strides = [1, 1]} : vector<4x128xf32> to vector<4x32xf32>
    %38 = arith.addf %36, %37 : vector<4x32xf32>
    %39 = arith.negf %38 : vector<4x32xf32>
    %40 = math.exp %39 : vector<4x32xf32>
    %cst_25 = arith.constant 1.000000e+00 : f32
    %41 = vector.broadcast %cst_25 : f32 to vector<4x32xf32>
    %42 = arith.addf %41, %40 : vector<4x32xf32>
    %43 = arith.divf %41, %42 : vector<4x32xf32>
    %44 = vector.extract_strided_slice %35 {offsets = [0, 32], sizes = [4, 32], strides = [1, 1]} : vector<4x128xf32> to vector<4x32xf32>
    %45 = vector.extract_strided_slice %33 {offsets = [0, 32], sizes = [4, 32], strides = [1, 1]} : vector<4x128xf32> to vector<4x32xf32>
    %46 = arith.addf %44, %45 : vector<4x32xf32>
    %47 = arith.negf %46 : vector<4x32xf32>
    %48 = math.exp %47 : vector<4x32xf32>
    %cst_26 = arith.constant 1.000000e+00 : f32
    %49 = vector.broadcast %cst_26 : f32 to vector<4x32xf32>
    %50 = arith.addf %49, %48 : vector<4x32xf32>
    %51 = arith.divf %49, %50 : vector<4x32xf32>
    %52 = vector.extract_strided_slice %35 {offsets = [0, 64], sizes = [4, 32], strides = [1, 1]} : vector<4x128xf32> to vector<4x32xf32>
    %53 = vector.extract_strided_slice %33 {offsets = [0, 64], sizes = [4, 32], strides = [1, 1]} : vector<4x128xf32> to vector<4x32xf32>
    %c0_27 = arith.constant 0 : index
    %c0_28 = arith.constant 0 : index
    %54 = vector.load %arg9[%c0_27, %c0_28] : memref<1x32xf32, #tpu.memory_space<vmem>>, vector<1x32xf32>
    %55 = vector.broadcast %54 : vector<1x32xf32> to vector<4x32xf32>
    %56 = arith.addf %53, %55 : vector<4x32xf32>
    %57 = arith.mulf %43, %56 : vector<4x32xf32>
    %58 = arith.addf %52, %57 : vector<4x32xf32>
    %59 = math.tanh %58 : vector<4x32xf32>
    %cst_29 = arith.constant 1.000000e+00 : f32
    %60 = vector.broadcast %cst_29 : f32 to vector<4x32xf32>
    %61 = arith.subf %60, %51 : vector<4x32xf32>
    %62 = arith.mulf %61, %59 : vector<4x32xf32>
    %63 = arith.mulf %51, %30 : vector<4x32xf32>
    %64 = arith.addf %62, %63 : vector<4x32xf32>
    %65 = vector.extract_strided_slice %64 {offsets = [0, 0], sizes = [1, 32], strides = [1, 1]} : vector<4x32xf32> to vector<1x32xf32>
    %66 = vector.extract_strided_slice %64 {offsets = [1, 0], sizes = [1, 32], strides = [1, 1]} : vector<4x32xf32> to vector<1x32xf32>
    %67 = vector.extract_strided_slice %64 {offsets = [2, 0], sizes = [1, 32], strides = [1, 1]} : vector<4x32xf32> to vector<1x32xf32>
    %68 = vector.extract_strided_slice %64 {offsets = [3, 0], sizes = [1, 32], strides = [1, 1]} : vector<4x32xf32> to vector<1x32xf32>
    %69 = tpu.concatenate %65, %66, %67, %68 in 1 : vector<1x32xf32>, vector<1x32xf32>, vector<1x32xf32>, vector<1x32xf32> -> vector<1x128xf32>
    %70 = arith.truncf %64 : vector<4x32xf32> to vector<4x32xbf16>
    %c0_30 = arith.constant 0 : index
    %c0_31 = arith.constant 0 : index
    %71 = vector.load %arg7[%c0_30, %c0_31] : memref<32x128xbf16, #tpu.memory_space<vmem>>, vector<32x128xbf16>
    %cst_32 = arith.constant dense<0.000000e+00> : vector<4x128xf32>
    %72 = tpu.matmul %70, %71, %cst_32 {dimension_numbers = #tpu.dot_dimension_numbers<[1], [0], [0], [1], [0, 0, 1, 1], [], []>} : vector<4x32xbf16>, vector<32x128xbf16>, vector<4x128xf32> -> vector<4x128xf32>
    %73 = vector.extract_strided_slice %29 {offsets = [1, 0, 0], sizes = [1, 4, 128], strides = [1, 1, 1]} : vector<2x4x128xf32> to vector<1x4x128xf32>
    %74 = vector.shape_cast %73 : vector<1x4x128xf32> to vector<4x128xf32>
    %75 = vector.extract_strided_slice %74 {offsets = [0, 0], sizes = [4, 32], strides = [1, 1]} : vector<4x128xf32> to vector<4x32xf32>
    %76 = vector.extract_strided_slice %72 {offsets = [0, 0], sizes = [4, 32], strides = [1, 1]} : vector<4x128xf32> to vector<4x32xf32>
    %77 = arith.addf %75, %76 : vector<4x32xf32>
    %78 = arith.negf %77 : vector<4x32xf32>
    %79 = math.exp %78 : vector<4x32xf32>
    %cst_33 = arith.constant 1.000000e+00 : f32
    %80 = vector.broadcast %cst_33 : f32 to vector<4x32xf32>
    %81 = arith.addf %80, %79 : vector<4x32xf32>
    %82 = arith.divf %80, %81 : vector<4x32xf32>
    %83 = vector.extract_strided_slice %74 {offsets = [0, 32], sizes = [4, 32], strides = [1, 1]} : vector<4x128xf32> to vector<4x32xf32>
    %84 = vector.extract_strided_slice %72 {offsets = [0, 32], sizes = [4, 32], strides = [1, 1]} : vector<4x128xf32> to vector<4x32xf32>
    %85 = arith.addf %83, %84 : vector<4x32xf32>
    %86 = arith.negf %85 : vector<4x32xf32>
    %87 = math.exp %86 : vector<4x32xf32>
    %cst_34 = arith.constant 1.000000e+00 : f32
    %88 = vector.broadcast %cst_34 : f32 to vector<4x32xf32>
    %89 = arith.addf %88, %87 : vector<4x32xf32>
    %90 = arith.divf %88, %89 : vector<4x32xf32>
    %91 = vector.extract_strided_slice %74 {offsets = [0, 64], sizes = [4, 32], strides = [1, 1]} : vector<4x128xf32> to vector<4x32xf32>
    %92 = vector.extract_strided_slice %72 {offsets = [0, 64], sizes = [4, 32], strides = [1, 1]} : vector<4x128xf32> to vector<4x32xf32>
    %c0_35 = arith.constant 0 : index
    %c0_36 = arith.constant 0 : index
    %93 = vector.load %arg9[%c0_35, %c0_36] : memref<1x32xf32, #tpu.memory_space<vmem>>, vector<1x32xf32>
    %94 = vector.broadcast %93 : vector<1x32xf32> to vector<4x32xf32>
    %95 = arith.addf %92, %94 : vector<4x32xf32>
    %96 = arith.mulf %82, %95 : vector<4x32xf32>
    %97 = arith.addf %91, %96 : vector<4x32xf32>
    %98 = math.tanh %97 : vector<4x32xf32>
    %cst_37 = arith.constant 1.000000e+00 : f32
    %99 = vector.broadcast %cst_37 : f32 to vector<4x32xf32>
    %100 = arith.subf %99, %90 : vector<4x32xf32>
    %101 = arith.mulf %100, %98 : vector<4x32xf32>
    %102 = arith.mulf %90, %64 : vector<4x32xf32>
    %103 = arith.addf %101, %102 : vector<4x32xf32>
    %104 = vector.extract_strided_slice %103 {offsets = [0, 0], sizes = [1, 32], strides = [1, 1]} : vector<4x32xf32> to vector<1x32xf32>
    %105 = vector.extract_strided_slice %103 {offsets = [1, 0], sizes = [1, 32], strides = [1, 1]} : vector<4x32xf32> to vector<1x32xf32>
    %106 = vector.extract_strided_slice %103 {offsets = [2, 0], sizes = [1, 32], strides = [1, 1]} : vector<4x32xf32> to vector<1x32xf32>
    %107 = vector.extract_strided_slice %103 {offsets = [3, 0], sizes = [1, 32], strides = [1, 1]} : vector<4x32xf32> to vector<1x32xf32>
    %108 = tpu.concatenate %104, %105, %106, %107 in 1 : vector<1x32xf32>, vector<1x32xf32>, vector<1x32xf32>, vector<1x32xf32> -> vector<1x128xf32>
    %109 = tpu.concatenate %69, %108 in 0 : vector<1x128xf32>, vector<1x128xf32> -> vector<2x128xf32>
    %110 = arith.truncf %109 : vector<2x128xf32> to vector<2x128xbf16>
    %c0_38 = arith.constant 0 : index
    %c0_39 = arith.constant 0 : index
    %111 = vector.load %arg10[%c0_38, %c0_39] : memref<128x128xbf16, #tpu.memory_space<vmem>>, vector<128x128xbf16>
    %cst_40 = arith.constant dense<0.000000e+00> : vector<2x128xf32>
    %112 = tpu.matmul %110, %111, %cst_40 {dimension_numbers = #tpu.dot_dimension_numbers<[1], [0], [0], [1], [0, 0, 1, 1], [], []>} : vector<2x128xbf16>, vector<128x128xbf16>, vector<2x128xf32> -> vector<2x128xf32>
    %113 = arith.addf %23, %112 : vector<2x128xf32>
    %c0_41 = arith.constant 0 : index
    %c0_42 = arith.constant 0 : index
    %114 = vector.load %arg11[%c0_41, %c0_42] : memref<1x128xf32, #tpu.memory_space<vmem>>, vector<1x128xf32>
    %115 = vector.broadcast %114 : vector<1x128xf32> to vector<2x128xf32>
    %116 = arith.addf %113, %115 : vector<2x128xf32>
    %c0_43 = arith.constant 0 : index
    %c0_44 = arith.constant 0 : index
    %117 = vector.load %arg12[%c0_43, %c0_44] : memref<2x128xf32, #tpu.memory_space<vmem>>, vector<2x128xf32>
    tpu.vector_store %arg12[%c0_43, %c0_44], %116 {strides = array<i32>} : memref<2x128xf32, #tpu.memory_space<vmem>>, vector<2x128xf32>,
    return
  }
  func.func @transform_0(%arg0: i32) -> (i32, i32, i32) {
    %c0_i32 = arith.constant 0 : i32
    %c0_i32_0 = arith.constant 0 : i32
    %c0_i32_1 = arith.constant 0 : i32
    %c0_i32_2 = arith.constant 0 : i32
    return %c0_i32, %c0_i32_0, %c0_i32_1 : i32, i32, i32
  }
  func.func @transform_1(%arg0: i32) -> (i32, i32) {
    %c0_i32 = arith.constant 0 : i32
    %c0_i32_0 = arith.constant 0 : i32
    %c0_i32_1 = arith.constant 0 : i32
    return %c0_i32, %c0_i32_0 : i32, i32
  }
  func.func @transform_2(%arg0: i32) -> (i32, i32, i32) {
    %c0_i32 = arith.constant 0 : i32
    %c0_i32_0 = arith.constant 0 : i32
    %c0_i32_1 = arith.constant 0 : i32
    %c0_i32_2 = arith.constant 0 : i32
    return %c0_i32, %c0_i32_0, %c0_i32_1 : i32, i32, i32
  }
  func.func @transform_3(%arg0: i32) -> (i32, i32) {
    %c0_i32 = arith.constant 0 : i32
    %c0_i32_0 = arith.constant 0 : i32
    %c0_i32_1 = arith.constant 0 : i32
    return %c0_i32, %c0_i32_0 : i32, i32
  }
  func.func @transform_4(%arg0: i32) -> (i32, i32, i32) {
    %c0_i32 = arith.constant 0 : i32
    %c0_i32_0 = arith.constant 0 : i32
    %c0_i32_1 = arith.constant 0 : i32
    %c0_i32_2 = arith.constant 0 : i32
    return %c0_i32, %c0_i32_0, %c0_i32_1 : i32, i32, i32
  }
  func.func @transform_5(%arg0: i32) -> (i32, i32) {
    %c0_i32 = arith.constant 0 : i32
    %c0_i32_0 = arith.constant 0 : i32
    %c0_i32_1 = arith.constant 0 : i32
    return %c0_i32, %c0_i32_0 : i32, i32
  }
  func.func @transform_6(%arg0: i32) -> (i32, i32) {
    %c0_i32 = arith.constant 0 : i32
    %c0_i32_0 = arith.constant 0 : i32
    %c0_i32_1 = arith.constant 0 : i32
    return %c0_i32, %c0_i32_0 : i32, i32
  }
  func.func @transform_7(%arg0: i32) -> (i32, i32, i32) {
    %c0_i32 = arith.constant 0 : i32
    %c0_i32_0 = arith.constant 0 : i32
    %c0_i32_1 = arith.constant 0 : i32
    %c0_i32_2 = arith.constant 0 : i32
    return %c0_i32, %c0_i32_0, %c0_i32_1 : i32, i32, i32
  }
  func.func @transform_8(%arg0: i32) -> (i32, i32) {
    %c0_i32 = arith.constant 0 : i32
    %c0_i32_0 = arith.constant 0 : i32
    %c0_i32_1 = arith.constant 0 : i32
    return %c0_i32, %c0_i32_0 : i32, i32
  }
  func.func @transform_9(%arg0: i32) -> (i32, i32) {
    %c0_i32 = arith.constant 0 : i32
    %c0_i32_0 = arith.constant 0 : i32
    %c0_i32_1 = arith.constant 0 : i32
    return %c0_i32, %c0_i32_0 : i32, i32
  }
  func.func @transform_10(%arg0: i32) -> (i32, i32) {
    %c0_i32 = arith.constant 0 : i32
    %c0_i32_0 = arith.constant 0 : i32
    %c0_i32_1 = arith.constant 0 : i32
    return %c0_i32, %c0_i32_0 : i32, i32
  }
  func.func @transform_11(%arg0: i32) -> (i32, i32) {
    %c0_i32 = arith.constant 0 : i32
    %c0_i32_0 = arith.constant 0 : i32
    %c0_i32_1 = arith.constant 0 : i32
    return %c0_i32, %c0_i32_0 : i32, i32
  }
}

</mosaic_0001>

<bundles_post_ra>
// kernel: cnn2rnn_forward.1
= control target key start
LH: loop header
LB: loop body
LE: loop exit
PB: predicated region body
PF: predicated region fallthrough
CT: control target
= control target key end

     0   :  { %vm82_vm0 = vcmask 1046528   ;;  %vm129_vm1 = vcmask 1045504   ;;  %s1769_s0 = inlined_call_operand.vmem [shape: bf16[2,18,54], index: 0, kind: input, shape index: {}]   ;;  %s1770_s1 = inlined_call_operand.vmem [shape: bf16[432,128], index: 1, kind: input, shape index: {}]   ;;  %s1771_s2 = inlined_call_operand.vmem [shape: f32[1,1,128], index: 2, kind: input, shape index: {}]   ;;  %s1772_s3 = inlined_call_operand.vmem [shape: bf16[128,128], index: 3, kind: input, shape index: {}]   ;;  %s1773_s4 = inlined_call_operand.vmem [shape: bf16[2,4,8], index: 4, kind: input, shape index: {}]   ;;  %s1774_s5 = inlined_call_operand.vmem [shape: bf16[8,128], index: 5, kind: input, shape index: {}]   ;;  %s1775_s6 = inlined_call_operand.vmem [shape: bf16[32,128], index: 6, kind: input, shape index: {}]   ;;  %s1776_s7 = inlined_call_operand.vmem [shape: f32[1,1,128], index: 7, kind: input, shape index: {}]   ;;  %s1777_s8 = inlined_call_operand.vmem [shape: f32[1,32], index: 8, kind: input, shape index: {}]   ;;  %s1778_s9 = inlined_call_operand.vmem [shape: bf16[128,128], index: 9, kind: input, shape index: {}]   ;;  %s1779_s10 = inlined_call_operand.vmem [shape: f32[1,128], index: 10, kind: input, shape index: {}]   ;;  %s1780_s11 = inlined_call_operand.hbm [shape: f32[2,128], index: 11, kind: output, shape index: {}]  }
   0x1   :  { %v1215_v0 = vld [vmem:[%s1769_s0] sm:$0xff]   ;;  %v42_v1 = vld [vmem:[%s1769_s0 + $0x8] sm:$0x1]  ;;  %v43_v5 = vld [vmem:[%s1769_s0 + $0xc] sm:$0xff]  }
   0x2   :  { %v1445_v2 = vunpack.c.l.bf16 %v1215_v0  ;;  %v1447_v3 = vunpack.c.h.bf16 %v1215_v0  ;;  %v48_v4 = vunpack.c.l.bf16 %v42_v1  ;;  %v1192_v6 = vld [vmem:[%s1770_s1 + $0xb8] sm:$0xff]  ;;  %v45_v7 = vld [vmem:[%s1769_s0 + $0x14] sm:$0x1]  ;;  %v1465_v15 = vunpack.c.l.bf16 %v43_v5 }
   0x3   :  { %v1191_v8 = vld [vmem:[%s1770_s1 + $0xb0] sm:$0xff]  ;;  %521 = vmatpush.bf16.msra.mxu2 %v1192_v6  ;;  %v1469_v18 = vunpack.c.h.bf16 %v43_v5  ;;  %v51_v19 = vunpack.c.l.bf16 %v45_v7 }
   0x4   :  { %v83_v9 = vrot.slane %v1445_v2, 1  ;;  %v84_v10 = vrot.slane %v1447_v3, 1  ;;  %v86_v11 = vrot.slane %v48_v4, 1  ;;  %v130_v12 = vrot.slane %v1445_v2, 2 }
   0x5   :  { %v131_v13 = vrot.slane %v1447_v3, 2  ;;  %v133_v14 = vrot.slane %v48_v4, 2  ;;  %v88_v23 = vrot.slane %v1465_v15, 1 }
   0x6   :  { %v85_v16 = vsel %vm82_vm0, %v83_v9, %v84_v10  ;;  %v87_v17 = vsel %vm82_vm0, %v84_v10, %v86_v11 }
   0x7   :  { %v1471_v20 = vpack.i.bf16 %v87_v17, %v85_v16  ;;  %v132_v21 = vsel %vm129_vm1, %v130_v12, %v131_v13  ;;  %v134_v22 = vsel %vm129_vm1, %v131_v13, %v133_v14 }
   0x8   :  { %16 = vsyncpa [#allocation3], 0  ;;  %v1240_v24 = vpack.i.bf16 %v134_v22, %v132_v21  ;;  %522 = vmatpush.bf16.msra.mxu2 %v1191_v8  ;;  %v1190_v25 = vld [vmem:[%s1770_s1 + $0xa8] sm:$0xff]  ;;  %s1367_s30 = smov 106   ;;  %v89_v26 = vrot.slane %v1469_v18, 1  ;;  %v91_v27 = vrot.slane %v51_v19, 1 }
   0x9   :  { %1231 = vrot.lane.b32.xlu0 %v1471_v20, %s1367_s30  ;;  %s1368_s12 = smov 77   ;;  %v1189_v31 = vld [vmem:[%s1770_s1 + $0xa0] sm:$0xff]  ;;  %v135_v32 = vrot.slane %v1465_v15, 2  ;;  %v136_v33 = vrot.slane %v1469_v18, 2  ;;  %v138_v34 = vrot.slane %v51_v19, 2  ;;  %s1369_s15 = smov 32  }
   0xa   :  { %1241 = vrot.lane.b32.xlu1 %v1240_v24, %s1368_s12  ;;  %v90_v28 = vsel %vm82_vm0, %v88_v23, %v89_v26  ;;  %v92_v29 = vsel %vm82_vm0, %v89_v26, %v91_v27  ;;  %s1370_s16 = smov 122   ;;  %v1188_v38 = vld [vmem:[%s1770_s1 + $0x98] sm:$0xff]  ;;  %v1195_v39 = vld [vmem:[%s1770_s1 + $0xd0] sm:$0xff]  ;;  %v1186_v41 = vld [vmem:[%s1770_s1 + $0x88] sm:$0xff]  ;;  %vm615_vm2 = vcmask 1043456   ;;  %vm201_vm3 = vcmask 261120  }
   0xb   :  { %v1483_v30 = vpack.i.bf16 %v92_v29, %v90_v28  ;;  %v137_v35 = vsel %vm129_vm1, %v135_v32, %v136_v33  ;;  %v139_v36 = vsel %vm129_vm1, %v136_v33, %v138_v34  ;;  %v1187_v40 = vld [vmem:[%s1770_s1 + $0x90] sm:$0xff]  ;;  %545 = vmatpush.bf16.msra.mxu3 %v1195_v39  ;;  %v1194_v42 = vld [vmem:[%s1770_s1 + $0xc8] sm:$0xff]  ;;  %v1185_v43 = vld [vmem:[%s1770_s1 + $0x80] sm:$0xff]  ;;  %vm206_vm4 = vcmask 654336   ;;  %s1371_s22 = smov 64   ;;  %s1374_s23 = smov 61  }
   0xc   :  { %523 = vmatpush.bf16.msra.mxu2 %v1190_v25  ;;  %v1255_v37 = vpack.i.bf16 %v139_v36, %v137_v35  ;;  %v1193_v44 = vld [vmem:[%s1770_s1 + $0xc0] sm:$0xff]  ;;  %vm176_vm5 = vcmask 392192   ;;  %v1554_v28 = vld [vmem:[%s1775_s6 + $0x8] sm:$0xff]  ;;  %vm612_vm6 = vcmask 64512   ;;  %s1375_s24 = smov 16   ;;  %s1376_s25 = smov 45  }
   0xd   :  { %1251 = vrot.lane.b32.xlu2 %v1483_v30, %s1367_s30  ;;  %v597_v45 = vld [vmem:[%s1774_s5] sm:$0xf]  ;;  %s1377_s20 = smov 96   ;;  %vm186_vm11 = vcmask 130048   ;;  %vm191_vm12 = vcmask 523264   ;;  %vm196_vm13 = vcmask 916480  }
   0xe   :  { %v617_v46 = vsel %vm615_vm2, %v597_v45, 0  ;;  %v595_v50 = vld [vmem:[%s1773_s4] sm:$0x3]  ;;  %v596_v51 = vld [vmem:[%s1773_s4 + $0x2] sm:$0x3]  ;;  %vm181_vm14 = vcmask 785408  }
   0xf   :  { %546 = vmatpush.bf16.msra.mxu3 %v1194_v42  ;;  %602 = vst [vmem:[#allocation1] ss:$4 sm:$0xff] %v595_v50  ;;  %v1325_v58 = vld [vmem:[%s1776_s7] ss:$0 sm:$0xff]  ;;  %vm896_vm15 = vcmask 1041409   ;;  %s1378_s21 = smov [#allocation2]  }
  0x10   :  { %524 = vmatpush.bf16.msra.mxu2 %v1189_v31  ;;  %605 = vst [vmem:[#allocation1 + $0x1] ss:$4 sm:$0xff] %v596_v51  ;;  %v1560_v32 = vld [vmem:[%s1775_s6] sm:$0xff]  ;;  %s972_s6 = sshll.u32 %s1378_s21, 4  ;;  %s974_s26 = sshll.u32 %s1780_s11, 4  ;;  %s973_s6 = int_to_ptr.vmem [resolvable:$true] %s972_s6  ;;  %s975_s26 = int_to_ptr.hbm [resolvable:$true] %s974_s26 }
  0x11   :  { %1236 = vrot.lane.b32.xlu0 %v1240_v24, %s1369_s15 }
  0x12   :  { %1246 = vrot.lane.b32.xlu1 %v1240_v24, %s1370_s16 }
  0x13   :  { %547 = vmatpush.bf16.msra.mxu3 %v1193_v44  ;;  %v1372_v44 = vmov 0  }
  0x14   :  { %525 = vmatpush.bf16.msra.mxu2 %v1188_v38 }
  0x15   :  { %1256 = vrot.lane.b32.xlu2 %v1255_v37, %s1369_s15 }
  0x17   :  { %626 = vmatpush.bf16.msrb.mxu3 %v617_v46  ;;  %v606_v6 = vld.sshfl [vmem:[#allocation1] sm:$0xff pattern:$0x73625140] }
  0x18   :  { %526 = vmatpush.bf16.msra.mxu2 %v1187_v40  ;;  %607 = vst [vmem:[#allocation1] ss:$2 sm:$0xff] %v1325_v58 }
  0x19   :  { %1261 = vrot.lane.b32.xlu0 %v1255_v37, %s1368_s12  ;;  %609 = vst [vmem:[#allocation1 + $0x1] ss:$2 sm:$0xff] %v1325_v58 }
  0x1a   :  { %1266 = vrot.lane.b32.xlu1 %v1255_v37, %s1370_s16 }
  0x1c   :  { %527 = vmatpush.bf16.msra.mxu2 %v1186_v41 }
  0x20   :  { %528 = vmatpush.bf16.msra.mxu2 %v1185_v43  ;;  %v1326_v43 = vld [vmem:[%s1777_s8] ss:$0 sm:$0xff]  ;;  %s1373_s8 = smov 90  }
  0x21   :  { %690 = vrot.lane.b32.xlu2 %v1326_v43, %s1371_s22 }
  0x67   :  { %v1521_v49 = vpop.permute.xlu2 %1251 }
  0x68   :  { %v1254_v9 = vunpack.i.h.bf16 %v1521_v49  ;;  %v1253_v10 = vunpack.i.l.bf16 %v1521_v49  ;;  %v1202_v49 = vld [vmem:[%s1772_s3 + $0x30] sm:$0xff] }
  0x6f   :  { %v1257_v1 = vpop.permute.xlu2 %1256 }
  0x70   :  { %v1259_v11 = vunpack.i.h.bf16 %v1257_v1  ;;  %v1258_v12 = vunpack.i.l.bf16 %v1257_v1  ;;  %v1270_v1 = vpack.i.bf16 %v1447_v3, %v1445_v2 }
  0x72   :  { %v204_v26 = vsel %vm201_vm3, %v1253_v10, %v1258_v12  ;;  %v205_v27 = vsel %vm201_vm3, %v1254_v9, %v1259_v11 }
  0x7b   :  { %v1519_v47 = vpop.permute.xlu0 %1231 }
  0x7c   :  { %v1242_v48 = vpop.permute.xlu1 %1241  ;;  %v1234_v53 = vunpack.i.h.bf16 %v1519_v47  ;;  %v1233_v54 = vunpack.i.l.bf16 %v1519_v47 }
  0x7d   :  { %v1244_v59 = vunpack.i.h.bf16 %v1242_v48  ;;  %v1243_v60 = vunpack.i.l.bf16 %v1242_v48 }
  0x83   :  { %v1237_v52 = vpop.permute.xlu0 %1236 }
  0x84   :  { %v1239_v55 = vunpack.i.h.bf16 %v1237_v52  ;;  %v1238_v56 = vunpack.i.l.bf16 %v1237_v52  ;;  %v1247_v57 = vpop.permute.xlu1 %1246 }
  0x85   :  { %v1249_v61 = vunpack.i.h.bf16 %v1247_v57  ;;  %v1248_v62 = vunpack.i.l.bf16 %v1247_v57 }
  0x86   :  { %v202_v63 = vsel %vm201_vm3, %v1233_v54, %v1238_v56  ;;  %v203_v0 = vsel %vm201_vm3, %v1234_v53, %v1239_v55  ;;  %v1578_v55 = vpop.permute.xlu2 %690 }
  0x87   :  { %v207_v4 = vsel %vm206_vm4, %v202_v63, %v1243_v60  ;;  %v208_v5 = vsel %vm206_vm4, %v203_v0, %v1244_v59  ;;  %v610_v59 = vld.sshfl [vmem:[#allocation1] sm:$0xff pattern:$0x75316420] }
  0x88   :  { %v212_v7 = vpack.c.bf16 %v1248_v62, %v207_v4  ;;  %v214_v8 = vpack.c.bf16 %v1249_v61, %v208_v5 }
  0x8a   :  { %v288_v13 = vunpack.c.h.b16 %v212_v7  ;;  %v292_v14 = vunpack.c.h.b16 %v214_v8  ;;  %v287_v16 = vunpack.c.l.b16 %v212_v7  ;;  %v291_v17 = vunpack.c.l.b16 %v214_v8 }
  0x8b   :  { %v1262_v19 = vpop.permute.xlu0 %1261 }
  0x8c   :  { %v303_v21 = vpack.c.b16 %v291_v17, %v287_v16  ;;  %v304_v22 = vpack.c.b16 %v292_v14, %v288_v13  ;;  %v1264_v23 = vunpack.i.h.bf16 %v1262_v19  ;;  %v1263_v24 = vunpack.i.l.bf16 %v1262_v19  ;;  %v1267_v25 = vpop.permute.xlu1 %1266 }
  0x8d   :  { %v1269_v29 = vunpack.i.h.bf16 %v1267_v25  ;;  %v1268_v31 = vunpack.i.l.bf16 %v1267_v25 }
  0x8e   :  { %529 = vmatmul.bf16.vlgmr.msra.gmra.mxu2 %v303_v21  ;;  %1091 = vmatmul.msk.bf16.vlgmr.msra.gmra.mxu3 %vm176_vm5, %v304_v22  ;;  %v209_v33 = vsel %vm206_vm4, %v204_v26, %v1263_v24  ;;  %v210_v34 = vsel %vm206_vm4, %v205_v27, %v1264_v23  ;;  %v1290_v21 = vpack.i.bf16 %v1469_v18, %v1465_v15  ;;  %v1176_v22 = vld [vmem:[%s1770_s1 + $0x38] sm:$0xff]  ;;  %v1183_v24 = vld [vmem:[%s1770_s1 + $0x70] sm:$0xff]  ;;  %v1174_v26 = vld [vmem:[%s1770_s1 + $0x28] sm:$0xff] }
  0x8f   :  { %660 = vmatpush.bf16.msra.mxu3 %v1554_v28  ;;  %v216_v35 = vpack.c.bf16 %v1268_v31, %v209_v33  ;;  %v218_v36 = vpack.c.bf16 %v1269_v29, %v210_v34  ;;  %v1184_v23 = vld [vmem:[%s1770_s1 + $0x78] sm:$0xff]  ;;  %483 = vmatpush.bf16.msra.mxu0 %v1176_v22  ;;  %v1182_v27 = vld [vmem:[%s1770_s1 + $0x68] sm:$0xff]  ;;  %v1173_v31 = vld [vmem:[%s1770_s1 + $0x20] sm:$0xff] }
  0x90   :  { %502 = vmatpush.bf16.msra.mxu1 %v1184_v23  ;;  %v1181_v33 = vld [vmem:[%s1770_s1 + $0x60] sm:$0xff] }
  0x91   :  { %v296_v37 = vunpack.c.h.b16 %v216_v35  ;;  %v300_v38 = vunpack.c.h.b16 %v218_v36  ;;  %v295_v39 = vunpack.c.l.b16 %v216_v35  ;;  %v299_v40 = vunpack.c.l.b16 %v218_v36  ;;  %v1172_v35 = vld [vmem:[%s1770_s1 + $0x18] sm:$0xff] }
  0x92   :  { %v1180_v36 = vld [vmem:[%s1770_s1 + $0x58] sm:$0xff] }
  0x93   :  { %661 = vmatpush.bf16.msra.mxu3 %v1560_v32  ;;  %v307_v41 = vpack.c.b16 %v299_v40, %v295_v39  ;;  %v308_v42 = vpack.c.b16 %v300_v38, %v296_v37  ;;  %v1171_v37 = vld [vmem:[%s1770_s1 + $0x10] sm:$0xff]  ;;  %v1178_v39 = vld [vmem:[%s1770_s1 + $0x48] sm:$0xff]  ;;  %v1169_v40 = vld [vmem:[%s1770_s1] sm:$0xff] }
  0x94   :  { %503 = vmatpush.bf16.msra.mxu1 %v1183_v24  ;;  %v1179_v38 = vld [vmem:[%s1770_s1 + $0x50] sm:$0xff] }
  0x98   :  { %504 = vmatpush.bf16.msra.mxu1 %v1182_v27 }
  0x9c   :  { %505 = vmatpush.bf16.msra.mxu1 %v1181_v33 }
  0x9e   :  { %534 = vmatmul.bf16.gmra.mxu2 %v307_v41  ;;  %1092 = vmatmul.msk.bf16.gmra.mxu3 %vm176_vm5, %v308_v42  ;;  %v1177_v41 = vld [vmem:[%s1770_s1 + $0x40] sm:$0xff] }
  0xa0   :  { %506 = vmatpush.bf16.msra.mxu1 %v1180_v36 }
  0xa4   :  { %507 = vmatpush.bf16.msra.mxu1 %v1179_v38 }
  0xa8   :  { %508 = vmatpush.bf16.msra.mxu1 %v1178_v39 }
  0xac   :  { %509 = vmatpush.bf16.msra.mxu1 %v1177_v41 }
  0xae   :  { %1093 = vmatmul.msk.bf16.vlgmr.msrb.gmra.mxu3 %vm612_vm6, %v606_v6 }
  0xbe   :  { %662 = vmatmul.bf16.vlgmr.msra.gmra.mxu3 %v1372_v44 }
 0x111   :  { %v1570_v45 = vpop.f32.mrf.mxu3 }
 0x119   :  { %v1572_v46 = vpop.f32.mrf.mxu3 }
 0x121   :  { %v1574_v48 = vpop.f32.mrf.mxu3 }
 0x129   :  { %v1576_v50 = vpop.f32.mrf.mxu3 }
 0x131   :  { %v628_v51 = vpop.f32.mrf.mxu3 }
 0x132   :  { %v1582_v60 = vadd.f32 %v628_v51, %v610_v59 }
 0x139   :  { %v630_v52 = vpop.f32.mrf.mxu3 }
 0x141   :  { %v663_v56 = vpop.f32.mrf.mxu3 }
 0x142   :  { %v693_v57 = vadd.f32 %v1578_v55, %v663_v56  ;;  %v667_v61 = vadd.f32 %v663_v56, %v1582_v60 }
 0x144   :  { %695 = vrot.lane.b32.xlu0 %v693_v57, %s1371_s22  ;;  %v1102_v62 = vmul.f32 -1.442695, %v667_v61 }
 0x146   :  { %1329 = vpow2.f32 %v1102_v62 }
 0x149   :  { %v665_v58 = vpop.f32.mrf.mxu3 }
 0x14c   :  { %v1330_v63 = vpop.eup %1329  ;;  %1271 = vrot.lane.b32.xlu0 %v1270_v1, %s1373_s8 }
 0x14d   :  { %v671_v0 = vadd.f32 1.0, %v1330_v63 }
 0x14f   :  { %1331 = vrcp.f32 %v671_v0  ;;  %v683_v11 = vand.u32 2147483648, %v671_v0  ;;  %vm677_vm8 = vweird.f32 %v671_v0  ;;  %v681_v12 = vand.u32 2147483647, %v671_v0 }
 0x151   :  { %v684_v14 = vor.u32 1.1754944e-38, %v683_v11  ;;  %vm682_vm10 = vcmp.eq.f32.partialorder %v681_v12, 8.507059e+37 }
 0x154   :  { %1286 = vrot.lane.b32.xlu0 %v1471_v20, %s1374_s23 }
 0x155   :  { %v1332_v4 = vpop.eup %1331 }
 0x156   :  { %v673_v5 = vmul.f32 %v1332_v4, %v671_v0  ;;  %vm678_vm7 = vweird.f32 %v1332_v4 }
 0x157   :  { %vm679_vm9 = vmor %vm677_vm8, %vm678_vm7 }
 0x158   :  { %v674_v6 = vsub.f32 1.0, %v673_v5 }
 0x15a   :  { %v675_v7 = vmul.f32 %v1332_v4, %v674_v6 }
 0x15c   :  { %v676_v8 = vadd.f32 %v1332_v4, %v675_v7  ;;  %1301 = vrot.lane.b32.xlu0 %v1290_v21, %s1376_s25 }
 0x15e   :  { %v680_v13 = vsel %vm679_vm9, %v1332_v4, %v676_v8 }
 0x15f   :  { %v685_v17 = vsel %vm682_vm10, %v684_v14, %v680_v13 }
 0x160   :  { %v705_v44 = vsub.f32 1.0, %v685_v17  ;;  %v711_v58 = vmul.f32 0.0, %v685_v17 }
 0x1b6   :  { %v696_v16 = vpop.permute.xlu0 %695 }
 0x1b7   :  { %v698_v19 = vmul.f32 %v696_v16, %v685_v17 }
 0x1b9   :  { %700 = vrot.lane.b32.xlu1 %v698_v19, %s1371_s22 }
 0x1be   :  { %v1272_v42 = vpop.permute.xlu0 %1271 }
 0x1bf   :  { %v1273_v52 = vunpack.i.l.bf16 %v1272_v42  ;;  %v1274_v61 = vunpack.i.h.bf16 %v1272_v42 }
 0x1c1   :  { %1276 = vrot.lane.b32.xlu1 %v1471_v20, %s1375_s24  ;;  %v1175_v20 = vld [vmem:[%s1770_s1 + $0x30] sm:$0xff] }
 0x1c2   :  { %484 = vmatpush.bf16.msra.mxu0 %v1175_v20 }
 0x1c6   :  { %485 = vmatpush.bf16.msra.mxu0 %v1174_v26  ;;  %v1287_v57 = vpop.permute.xlu0 %1286 }
 0x1c9   :  { %1291 = vrot.lane.b32.xlu1 %v1290_v21, %s1373_s8 }
 0x1ca   :  { %486 = vmatpush.bf16.msra.mxu0 %v1173_v31 }
 0x1ce   :  { %487 = vmatpush.bf16.msra.mxu0 %v1172_v35  ;;  %v1302_v16 = vpop.permute.xlu0 %1301 }
 0x1cf   :  { %v1304_v26 = vunpack.i.h.bf16 %v1302_v16 }
 0x1d1   :  { %1306 = vrot.lane.b32.xlu1 %v1483_v30, %s1374_s23 }
 0x1d2   :  { %488 = vmatpush.bf16.msra.mxu0 %v1171_v37 }
 0x22b   :  { %v701_v25 = vpop.permute.xlu1 %700 }
 0x22c   :  { %v703_v29 = vadd.f32 %v701_v25, %v1582_v60 }
 0x22e   :  { %1333 = vtanh.f32 %v703_v29 }
 0x233   :  { %v1277_v43 = vpop.permute.xlu1 %1276 }
 0x234   :  { %v1334_v34 = vpop.eup %1333  ;;  %v1278_v56 = vunpack.i.l.bf16 %v1277_v43  ;;  %v1279_v62 = vunpack.i.h.bf16 %v1277_v43 }
 0x235   :  { %707 = vrot.lane.b32.xlu2 %v1334_v34, %s1377_s20 }
 0x236   :  { %v188_v5 = vsel %vm186_vm11, %v1274_v61, %v1279_v62 }
 0x23b   :  { %v1292_v0 = vpop.permute.xlu1 %1291 }
 0x23c   :  { %v1293_v25 = vunpack.i.l.bf16 %v1292_v0 }
 0x23d   :  { %1281 = vrot.lane.b32.xlu2 %v1270_v1, %s1376_s25  ;;  %v1288_v1 = vunpack.i.l.bf16 %v1287_v57 }
 0x243   :  { %v1307_v23 = vpop.permute.xlu1 %1306 }
 0x244   :  { %v1309_v35 = vunpack.i.h.bf16 %v1307_v23  ;;  %v1308_v36 = vunpack.i.l.bf16 %v1307_v23  ;;  %v1197_v23 = vld [vmem:[%s1772_s3 + $0x8] sm:$0xff] }
 0x245   :  { %1296 = vrot.lane.b32.xlu2 %v1483_v30, %s1375_s24  ;;  %v1170_v30 = vld [vmem:[%s1770_s1 + $0x8] sm:$0xff] }
 0x246   :  { %489 = vmatpush.bf16.msra.mxu0 %v1170_v30 }
 0x24a   :  { %490 = vmatpush.bf16.msra.mxu0 %v1169_v40 }
 0x24e   :  { %744 = vmatpush.bf16.msrb.mxu0 %v1554_v28  ;;  %v187_v28 = vsel %vm186_vm11, %v1273_v52, %v1278_v56 }
 0x24f   :  { %v192_v6 = vsel %vm191_vm12, %v187_v28, %v1288_v1  ;;  %v1327_v1 = vld [vmem:[%s1771_s2] ss:$0 sm:$0xff]  ;;  %v1201_v28 = vld [vmem:[%s1772_s3 + $0x28] sm:$0xff] }
 0x250   :  { %v197_v21 = vsel %vm196_vm13, %v192_v6, %v1233_v54  ;;  %v1200_v6 = vld [vmem:[%s1772_s3 + $0x20] sm:$0xff] }
 0x252   :  { %745 = vmatpush.bf16.msrb.mxu0 %v1560_v32  ;;  %v1289_v32 = vunpack.i.h.bf16 %v1287_v57 }
 0x254   :  { %v193_v8 = vsel %vm191_vm12, %v188_v5, %v1289_v32 }
 0x255   :  { %v198_v22 = vsel %vm196_vm13, %v193_v8, %v1234_v53  ;;  %v180_v53 = vsel %vm176_vm5, %v1469_v18, %v1304_v26 }
 0x28f   :  { %v708_v51 = vpop.permute.xlu2 %707 }
 0x290   :  { %v710_v59 = vmul.f32 %v708_v51, %v705_v44 }
 0x292   :  { %v1648_v63 = vadd.f32 %v711_v58, %v710_v59 }
 0x294   :  { %v731_v4 = vpack.c.bf16 %v1648_v63, %v1648_v63 }
 0x296   :  { %733 = vrot.lane.b32.xlu2 %v731_v4, %s1377_s20 }
 0x297   :  { %v1282_v7 = vpop.permute.xlu2 %1281 }
 0x298   :  { %v1284_v11 = vunpack.i.h.bf16 %v1282_v7  ;;  %v1283_v12 = vunpack.i.l.bf16 %v1282_v7 }
 0x29a   :  { %v178_v13 = vsel %vm176_vm5, %v1447_v3, %v1284_v11  ;;  %v177_v14 = vsel %vm176_vm5, %v1445_v2, %v1283_v12  ;;  %v1294_v3 = vunpack.i.h.bf16 %v1292_v0  ;;  %v1303_v2 = vunpack.i.l.bf16 %v1302_v16  ;;  %v1199_v11 = vld [vmem:[%s1772_s3 + $0x18] sm:$0xff] }
 0x29b   :  { %v182_v17 = vsel %vm181_vm14, %v177_v14, %v1273_v52  ;;  %v183_v19 = vsel %vm181_vm14, %v178_v13, %v1274_v61 }
 0x29c   :  { %v211_v20 = vpack.c.bf16 %v197_v21, %v182_v17  ;;  %v213_v24 = vpack.c.bf16 %v198_v22, %v183_v19  ;;  %v179_v40 = vsel %vm176_vm5, %v1465_v15, %v1303_v2  ;;  %v185_v44 = vsel %vm181_vm14, %v180_v53, %v1294_v3  ;;  %v1198_v19 = vld [vmem:[%s1772_s3 + $0x10] sm:$0xff] }
 0x29d   :  { %v184_v43 = vsel %vm181_vm14, %v179_v40, %v1293_v25  ;;  %vm812_vm5 = vcmask 1040384  }
 0x29e   :  { %v285_v27 = vunpack.c.l.b16 %v211_v20  ;;  %v289_v29 = vunpack.c.l.b16 %v213_v24  ;;  %v286_v31 = vunpack.c.h.b16 %v211_v20  ;;  %v290_v33 = vunpack.c.h.b16 %v213_v24 }
 0x29f   :  { %v1297_v34 = vpop.permute.xlu2 %1296 }
 0x2a0   :  { %v1299_v37 = vunpack.i.h.bf16 %v1297_v34  ;;  %v1298_v54 = vunpack.i.l.bf16 %v1297_v34  ;;  %v301_v38 = vpack.c.b16 %v289_v29, %v285_v27  ;;  %v302_v47 = vpack.c.b16 %v290_v33, %v286_v31  ;;  %v1196_v27 = vld [vmem:[%s1772_s3] sm:$0xff] }
 0x2a2   :  { %v189_v30 = vsel %vm186_vm11, %v1293_v25, %v1298_v54  ;;  %v190_v39 = vsel %vm186_vm11, %v1294_v3, %v1299_v37  ;;  %491 = vmatmul.bf16.vlgmr.msra.gmra.mxu0 %v301_v38  ;;  %510 = vmatmul.bf16.vlgmr.msra.gmra.mxu1 %v302_v47 }
 0x2a3   :  { %v194_v41 = vsel %vm191_vm12, %v189_v30, %v1308_v36  ;;  %v195_v42 = vsel %vm191_vm12, %v190_v39, %v1309_v35 }
 0x2a4   :  { %v199_v18 = vsel %vm196_vm13, %v194_v41, %v1253_v10  ;;  %v200_v51 = vsel %vm196_vm13, %v195_v42, %v1254_v9  ;;  %v1203_v10 = vld [vmem:[%s1772_s3 + $0x38] sm:$0xff]  ;;  %v530_v9 = vpop.f32.mrf.mxu2 }
 0x2a5   :  { %v215_v52 = vpack.c.bf16 %v199_v18, %v184_v43  ;;  %v217_v15 = vpack.c.bf16 %v200_v51, %v185_v44  ;;  %948 = vmatpush.bf16.msrb.mxu2 %v1203_v10 }
 0x2a7   :  { %v293_v56 = vunpack.c.l.b16 %v215_v52  ;;  %v297_v57 = vunpack.c.l.b16 %v217_v15  ;;  %v294_v58 = vunpack.c.h.b16 %v215_v52  ;;  %v298_v59 = vunpack.c.h.b16 %v217_v15 }
 0x2a9   :  { %v305_v61 = vpack.c.b16 %v297_v57, %v293_v56  ;;  %v306_v62 = vpack.c.b16 %v298_v59, %v294_v58  ;;  %949 = vmatpush.bf16.msrb.mxu2 %v1202_v49 }
 0x2ac   :  { %v532_v8 = vpop.f32.mrf.mxu2 }
 0x2ad   :  { %950 = vmatpush.bf16.msrb.mxu2 %v1201_v28 }
 0x2b1   :  { %951 = vmatpush.bf16.msrb.mxu2 %v1200_v6 }
 0x2b2   :  { %496 = vmatmul.bf16.gmra.mxu0 %v305_v61  ;;  %515 = vmatmul.bf16.gmra.mxu1 %v306_v62 }
 0x2b4   :  { %v535_v29 = vpop.f32.mrf.mxu2 }
 0x2b5   :  { %952 = vmatpush.bf16.msrb.mxu2 %v1199_v11 }
 0x2b9   :  { %953 = vmatpush.bf16.msrb.mxu2 %v1198_v19 }
 0x2bc   :  { %v537_v38 = vpop.f32.mrf.mxu2 }
 0x2bd   :  { %954 = vmatpush.bf16.msrb.mxu2 %v1197_v23 }
 0x2c1   :  { %955 = vmatpush.bf16.msrb.mxu2 %v1196_v27 }
 0x2f0   :  { %v734_v0 = vpop.permute.xlu2 %733 }
 0x2f1   :  { %1103 = vmatmul.msk.bf16.vlgmr.msrb.gmra.mxu0 %vm201_vm3, %v734_v0 }
 0x31f   :  { %v492_v32 = vpop.f32.mrf.mxu0  ;;  %v511_v4 = vpop.f32.mrf.mxu1 }
 0x320   :  { %v493_v5 = vadd.f32 %v1327_v1, %v492_v32 }
 0x322   :  { %v512_v7 = vadd.f32 %v511_v4, %v493_v5 }
 0x324   :  { %v531_v14 = vadd.f32 %v530_v9, %v512_v7 }
 0x326   :  { %v550_v21 = vadd.f32 %v1570_v45, %v531_v14 }
 0x327   :  { %v494_v12 = vpop.f32.mrf.mxu0  ;;  %v513_v13 = vpop.f32.mrf.mxu1 }
 0x328   :  { %v495_v16 = vadd.f32 %v1327_v1, %v494_v12  ;;  %v559_v25 = vmax.f32 %v550_v21, 0.0 }
 0x32a   :  { %v514_v17 = vadd.f32 %v513_v13, %v495_v16 }
 0x32c   :  { %v533_v22 = vadd.f32 %v532_v8, %v514_v17 }
 0x32e   :  { %v552_v20 = vadd.f32 %v1572_v46, %v533_v22 }
 0x32f   :  { %v497_v24 = vpop.f32.mrf.mxu0  ;;  %v516_v3 = vpop.f32.mrf.mxu1 }
 0x330   :  { %v560_v26 = vmax.f32 %v552_v20, 0.0  ;;  %v498_v2 = vadd.f32 %v1327_v1, %v497_v24 }
 0x332   :  { %v563_v45 = vadd.f32 %v560_v26, %v559_v25  ;;  %v517_v31 = vadd.f32 %v516_v3, %v498_v2 }
 0x334   :  { %v564_v33 = vrot.slane %v563_v45, 4  ;;  %v536_v35 = vadd.f32 %v535_v29, %v517_v31  ;;  %v724_v29 = vperm.slane %v1648_v63, 3 }
 0x336   :  { %v565_v46 = vadd.f32 %v564_v33, %v563_v45  ;;  %v555_v47 = vadd.f32 %v1574_v48, %v536_v35  ;;  %v720_v45 = vperm.slane %v1648_v63, 2 }
 0x337   :  { %v499_v34 = vpop.f32.mrf.mxu0  ;;  %v518_v37 = vpop.f32.mrf.mxu1 }
 0x338   :  { %v500_v36 = vadd.f32 %v1327_v1, %v499_v34  ;;  %v566_v30 = vrot.slane %v565_v46, 2  ;;  %v561_v40 = vmax.f32 %v555_v47, 0.0  ;;  %v633_v1 = vrot.slane %v1582_v60, 4  ;;  %v1211_v47 = vld [vmem:[%s1778_s9 + $0x28] sm:$0xff] }
 0x339   :  { %v714_v34 = vperm.slane %v1648_v63, 0 }
 0x33a   :  { %v519_v54 = vadd.f32 %v518_v37, %v500_v36  ;;  %v567_v42 = vadd.f32 %v566_v30, %v565_v46  ;;  %v1209_v30 = vld [vmem:[%s1778_s9 + $0x18] sm:$0xff] }
 0x33c   :  { %v538_v53 = vadd.f32 %v537_v38, %v519_v54  ;;  %v568_v51 = vrot.slane %v567_v42, 1  ;;  %v1213_v54 = vld [vmem:[%s1778_s9 + $0x38] sm:$0xff]  ;;  %v1212_v38 = vld [vmem:[%s1778_s9 + $0x30] sm:$0xff] }
 0x33d   :  { %879 = vmatpush.bf16.msrb.mxu1 %v1213_v54 }
 0x33e   :  { %v557_v39 = vadd.f32 %v1576_v50, %v538_v53  ;;  %v569_v56 = vadd.f32 %v568_v51, %v567_v42  ;;  %v1210_v53 = vld [vmem:[%s1778_s9 + $0x20] sm:$0xff] }
 0x340   :  { %v562_v41 = vmax.f32 %v557_v39, 0.0  ;;  %v577_v59 = vpack.c.bf16 %v569_v56, %v569_v56  ;;  %v1208_v39 = vld [vmem:[%s1778_s9 + $0x10] sm:$0xff] }
 0x341   :  { %880 = vmatpush.bf16.msrb.mxu1 %v1212_v38 }
 0x342   :  { %v570_v43 = vadd.f32 %v562_v41, %v561_v40  ;;  %v894_v48 = vunpack.c.l.b16 %v577_v59  ;;  %v1207_v40 = vld [vmem:[%s1778_s9 + $0x8] sm:$0xff]  ;;  %v1206_v41 = vld [vmem:[%s1778_s9] sm:$0xff] }
 0x344   :  { %v571_v44 = vrot.slane %v570_v43, 4 }
 0x345   :  { %881 = vmatpush.bf16.msrb.mxu1 %v1211_v47 }
 0x346   :  { %v572_v18 = vadd.f32 %v571_v44, %v570_v43 }
 0x348   :  { %v573_v52 = vrot.slane %v572_v18, 2 }
 0x349   :  { %882 = vmatpush.bf16.msrb.mxu1 %v1210_v53 }
 0x34a   :  { %v574_v15 = vadd.f32 %v573_v52, %v572_v18  ;;  %v718_v52 = vperm.slane %v1648_v63, 1 }
 0x34c   :  { %v575_v57 = vrot.slane %v574_v15, 1 }
 0x34d   :  { %883 = vmatpush.bf16.msrb.mxu1 %v1209_v30 }
 0x34e   :  { %v576_v58 = vadd.f32 %v575_v57, %v574_v15 }
 0x350   :  { %v578_v61 = vpack.c.bf16 %v576_v58, %v576_v58 }
 0x351   :  { %884 = vmatpush.bf16.msrb.mxu1 %v1208_v39 }
 0x352   :  { %v895_v62 = vunpack.c.l.b16 %v578_v61 }
 0x354   :  { %v897_v0 = vsel %vm896_vm15, %v895_v62, %v894_v48 }
 0x355   :  { %v898_v10 = vpack.c.b16 %v897_v0, %v897_v0  ;;  %885 = vmatpush.bf16.msrb.mxu1 %v1207_v40 }
 0x357   :  { %956 = vmatmul.bf16.vlgmr.msrb.gmra.mxu2 %v898_v10 }
 0x359   :  { %886 = vmatpush.bf16.msrb.mxu1 %v1206_v41 }
 0x36e   :  { %v747_v50 = vpop.f32.mrf.mxu0 }
 0x36f   :  { %v771_v49 = vadd.f32 %v747_v50, %v1578_v55  ;;  %v751_v28 = vadd.f32 %v747_v50, %v633_v1 }
 0x371   :  { %773 = vrot.lane.b32.xlu0 %v771_v49, %s1371_s22  ;;  %v1104_v32 = vmul.f32 -1.442695, %v751_v28 }
 0x373   :  { %1335 = vpow2.f32 %v1104_v32 }
 0x376   :  { %v749_v9 = vpop.f32.mrf.mxu0 }
 0x379   :  { %v1336_v4 = vpop.eup %1335 }
 0x37a   :  { %v755_v5 = vadd.f32 1.0, %v1336_v4 }
 0x37c   :  { %1337 = vrcp.f32 %v755_v5  ;;  %v767_v55 = vand.u32 2147483648, %v755_v5  ;;  %vm761_vm1 = vweird.f32 %v755_v5  ;;  %v765_v14 = vand.u32 2147483647, %v755_v5 }
 0x37e   :  { %v768_v60 = vor.u32 1.1754944e-38, %v767_v55  ;;  %vm766_vm4 = vcmp.eq.f32.partialorder %v765_v14, 8.507059e+37 }
 0x382   :  { %v1338_v6 = vpop.eup %1337 }
 0x383   :  { %v757_v7 = vmul.f32 %v1338_v6, %v755_v5  ;;  %vm762_vm0 = vweird.f32 %v1338_v6 }
 0x384   :  { %vm763_vm2 = vmor %vm761_vm1, %vm762_vm0 }
 0x385   :  { %v758_v8 = vsub.f32 1.0, %v757_v7 }
 0x387   :  { %v759_v11 = vmul.f32 %v1338_v6, %v758_v8 }
 0x389   :  { %v760_v13 = vadd.f32 %v1338_v6, %v759_v11 }
 0x38b   :  { %v764_v16 = vsel %vm763_vm2, %v1338_v6, %v760_v13 }
 0x38c   :  { %v769_v21 = vsel %vm766_vm4, %v768_v60, %v764_v16 }
 0x38d   :  { %v783_v3 = vsub.f32 1.0, %v769_v21  ;;  %v789_v26 = vmul.f32 %v769_v21, %v1648_v63 }
 0x3da   :  { %v1720_v12 = vpop.f32.mrf.mxu2 }
 0x3e2   :  { %v959_v17 = vpop.f32.mrf.mxu2 }
 0x3e3   :  { %v774_v19 = vpop.permute.xlu0 %773 }
 0x3e4   :  { %v776_v22 = vmul.f32 %v774_v19, %v769_v21 }
 0x3e6   :  { %778 = vrot.lane.b32.xlu1 %v776_v22, %s1371_s22 }
 0x458   :  { %v779_v23 = vpop.permute.xlu1 %778 }
 0x459   :  { %v781_v20 = vadd.f32 %v779_v23, %v633_v1  ;;  %v1328_v1 = vld [vmem:[%s1779_s10] ss:$0 sm:$0xff] }
 0x45b   :  { %1339 = vtanh.f32 %v781_v20 }
 0x461   :  { %v1340_v24 = vpop.eup %1339 }
 0x462   :  { %785 = vrot.lane.b32.xlu2 %v1340_v24, %s1377_s20 }
 0x4bc   :  { %v786_v25 = vpop.permute.xlu2 %785 }
 0x4bd   :  { %v788_v2 = vmul.f32 %v786_v25, %v783_v3 }
 0x4bf   :  { %v790_v27 = vadd.f32 %v789_v26, %v788_v2 }
 0x4c1   :  { %v802_v31 = vperm.slane %v790_v27, 3  ;;  %v798_v33 = vperm.slane %v790_v27, 2  ;;  %v792_v35 = vperm.slane %v790_v27, 0  ;;  %v796_v15 = vperm.slane %v790_v27, 1 }
 0x4c3   :  { %v1320_v36 = vpack.i.bf16 %v724_v29, %v802_v31  ;;  %v1315_v37 = vpack.i.bf16 %v720_v45, %v798_v33  ;;  %v1310_v46 = vpack.i.bf16 %v714_v34, %v792_v35 }
 0x4c5   :  { %1321 = vrot.lane.b32.xlu2 %v1320_v36, %s1371_s22  ;;  %1316 = vrot.lane.b32.xlu1 %v1315_v37, %s1369_s15 }
 0x4c6   :  { %1311 = vrot.lane.b32.xlu0 %v1310_v46, %s1377_s20 }
 0x51f   :  { %v1322_v43 = vpop.permute.xlu2 %1321 }
 0x520   :  { %v1323_v58 = vunpack.i.l.bf16 %v1322_v43  ;;  %v1324_v0 = vunpack.i.h.bf16 %v1322_v43 }
 0x537   :  { %v1317_v42 = vpop.permute.xlu1 %1316 }
 0x538   :  { %v1319_v44 = vunpack.i.h.bf16 %v1317_v42  ;;  %v1318_v18 = vunpack.i.l.bf16 %v1317_v42  ;;  %v1312_v51 = vpop.permute.xlu0 %1311 }
 0x539   :  { %v1314_v56 = vunpack.i.h.bf16 %v1312_v51  ;;  %v1313_v57 = vunpack.i.l.bf16 %v1312_v51 }
 0x53b   :  { %v728_v59 = vsel %vm201_vm3, %v1314_v56, %v718_v52  ;;  %v806_v61 = vsel %vm201_vm3, %v1313_v57, %v796_v15 }
 0x53c   :  { %v729_v48 = vsel %vm191_vm12, %v728_v59, %v1319_v44  ;;  %v807_v62 = vsel %vm191_vm12, %v806_v61, %v1318_v18 }
 0x53d   :  { %v808_v10 = vsel %vm181_vm14, %v807_v62, %v1323_v58  ;;  %v730_v49 = vsel %vm181_vm14, %v729_v48, %v1324_v0 }
 0x53e   :  { %v810_v50 = vrot.slane %v808_v10, 7 }
 0x540   :  { %v813_v63 = vsel %vm812_vm5, %v730_v49, %v810_v50 }
 0x541   :  { %v814_v9 = vpack.c.bf16 %v813_v63, %v813_v63 }
 0x543   :  { %887 = vmatmul.bf16.vlgmr.msrb.gmra.mxu1 %v814_v9 }
 0x5c0   :  { %v888_v28 = vpop.f32.mrf.mxu1 }
 0x5c1   :  { %v958_v32 = vadd.f32 %v1720_v12, %v888_v28 }
 0x5c3   :  { %v965_v4 = vadd.f32 %v1328_v1, %v958_v32 }
 0x5c5   :  { %966 = vst [vmem:[#allocation2] sm:$0x3] %v965_v4 }
 0x5c6   :  { %977 = dma.vmem_to_hbm [thread:$0]  %s973_s6, 32, %s975_s26, [#allocation3]  }
 0x5c8   :  { %v890_v5 = vpop.f32.mrf.mxu1 }
 0x5c9   :  { %1365 = dma.done.wait [#allocation3], 32  }
 0x5ca   :  { %1366 = vsyncadd [#allocation3], 4294967264 }
 0x5cb   :  { %982 = vsyncpa [#allocation3], 1 }

</bundles_post_ra>
